<compile_context>
chip_gen: v6e
topology: v6e:2x2x1
jax: 0.10.0
libtpu: 0.0.40
codegen_flags: <defaults>
</compile_context>

<pallas_src>
import functools

import jax
import jax.numpy as jnp
from jax import lax
from jax.experimental import pallas as pl
from jax.experimental.pallas import tpu as pltpu

LANE = 128   # lane width (last dim)
TR = 4096    # rows per grid step -> 2 MiB f32 per input per buffer
SUB = 8      # sublane height of the VMEM accumulator


def _bce_sum_kernel(o_ref, t_ref, out_ref, acc_ref, *, rows, tr):
    """Accumulates sum_j [ t*clamp(log o,-100) + (1-t)*clamp(log(1-o),-100) ]
    over the valid rows; the final step writes MINUS that sum (the BCE sum)."""
    i = pl.program_id(0)

    @pl.when(i == 0)
    def _():
        acc_ref[...] = jnp.zeros_like(acc_ref)

    o = o_ref[...].astype(jnp.float32)
    t = t_ref[...].astype(jnp.float32)

    def folded_sum(o_v, t_v):
        log_o = jnp.maximum(jnp.log(o_v), jnp.float32(-100.0))
        log_1mo = jnp.maximum(jnp.log(1.0 - o_v), jnp.float32(-100.0))
        # == t*log_o + (1-t)*log_1mo with one sub + one mul + one add / elem.
        per_elem = log_1mo + t_v * (log_o - log_1mo)
        # Fold vreg-aligned row groups of 8 into the (8,128) accumulator
        # (pure VPU adds); cross-lane reduce happens once, at the end.
        return per_elem.reshape(-1, SUB, LANE).sum(axis=0)

    # n (hence rows) is a static Python int: bake the valid-row bound in.
    valid_rows = rows - i * tr

    @pl.when(valid_rows >= tr)            # full tile: zero masking overhead
    def _():
        acc_ref[...] += folded_sum(o, t)

    @pl.when(valid_rows < tr)             # boundary tile: sanitize OOB rows
    def _():
        row_id = lax.broadcasted_iota(jnp.int32, (tr, LANE), 0)
        m = row_id < valid_rows
        # (o=1, t=1) contributes exactly 0: 1*log(1) + 0*clamp(log 0,-100) = 0,
        # and keeps garbage/NaN in the padded region out of the logs.
        acc_ref[...] += folded_sum(jnp.where(m, o, 1.0), jnp.where(m, t, 1.0))

    @pl.when(i == pl.num_programs(0) - 1)
    def _():
        # Single negation for the whole reduction (BCE sum is -accumulated sum).
        out_ref[0, 0] = -jnp.sum(acc_ref[...])


def _sublane_req(dtype):
    # Sublane packing multiple: f32 -> 8, bf16/f16 -> 16, int8/fp8 -> 32.
    itemsize = jnp.dtype(dtype).itemsize
    return {1: 32, 2: 16, 4: 8, 8: 8}.get(itemsize, 8)


def _bce_sum_slab(o2, t2):
    """Sum of per-element BCE over a (rows, 128) slab via one pallas_call.
    Returns None if the slab is too small to be worth a kernel launch."""
    rows = o2.shape[0]
    req = max(_sublane_req(o2.dtype), _sublane_req(t2.dtype))
    tr = min(TR, (rows // req) * req)
    if tr == 0:
        return None
    steps = pl.cdiv(rows, tr)

    kernel = functools.partial(_bce_sum_kernel, rows=rows, tr=tr)
    in_bytes = rows * LANE * (jnp.dtype(o2.dtype).itemsize
                              + jnp.dtype(t2.dtype).itemsize)

    out = pl.pallas_call(
        kernel,
        out_shape=jax.ShapeDtypeStruct((1, 1), jnp.float32),
        grid_spec=pltpu.PrefetchScalarGridSpec(
            num_scalar_prefetch=0,
            grid=(steps,),
            in_specs=[pl.BlockSpec((tr, LANE), lambda i: (i, 0)),
                      pl.BlockSpec((tr, LANE), lambda i: (i, 0))],
            out_specs=pl.BlockSpec((1, 1), lambda i: (0, 0),
                                   memory_space=pltpu.SMEM),
            scratch_shapes=[pltpu.VMEM((SUB, LANE), jnp.float32)],
        ),
        compiler_params=pltpu.CompilerParams(
            dimension_semantics=("arbitrary",)),
        cost_estimate=pl.CostEstimate(
            flops=7 * rows * LANE,
            transcendentals=2 * rows * LANE,
            bytes_accessed=in_bytes + 4),
    )(o2, t2)
    return out[0, 0]


def _bce_sum_jnp(o, t):
    """Plain-jnp BCE sum for tiny tails / tiny inputs."""
    o = o.astype(jnp.float32)
    t = t.astype(jnp.float32)
    log_o = jnp.maximum(jnp.log(o), -100.0)
    log_1mo = jnp.maximum(jnp.log(1.0 - o), -100.0)
    return -jnp.sum(log_1mo + t * (log_o - log_1mo))


def cross_entropy_loss_2d(output, target):
    """Equivalent of CrossEntropyLoss2d().forward(output, target):
    nn.BCELoss(weight=None, reduction='mean') on probabilities."""
    assert output.shape == target.shape
    n = output.size
    o = output.reshape(-1)
    t = target.reshape(-1)

    n_main = (n // LANE) * LANE
    total = jnp.float32(0.0)

    if n_main > 0:
        # Lane-dense view of the full array.  When n % 128 == 0 (the common
        # NCHW case) this is a pure reshape: no slice copy, no pad copy.
        o2 = (o if n_main == n else o[:n_main]).reshape(-1, LANE)
        t2 = (t if n_main == n else t[:n_main]).reshape(-1, LANE)
        s = _bce_sum_slab(o2, t2)
        if s is None:
            # Fewer than 8 full rows: a kernel launch costs more than it saves.
            s = _bce_sum_jnp(o2, t2)
        total = total + s

    if n_main < n:
        # < 128 leftover elements: plain jnp, no pad, no second kernel launch.
        total = total + _bce_sum_jnp(o[n_main:], t[n_main:])

    # reduction='mean': divide by the true element count.
    return total / jnp.float32(n)


def _reference_bce_mean(output, target):
    o = output.astype(jnp.float32)
    t = target.astype(jnp.float32)
    log_o = jnp.maximum(jnp.log(o), -100.0)
    log_1mo = jnp.maximum(jnp.log(1.0 - o), -100.0)
    return jnp.mean(-(t * log_o + (1.0 - t) * log_1mo))


if __name__ == "__main__":
    key = jax.random.PRNGKey(0)
    k1, k2, k3, k4 = jax.random.split(key, 4)

    # Small NCHW probabilities and soft targets (single-tile kernel path).
    N, C, H, W = 2, 4, 16, 16
    output = jax.nn.sigmoid(jax.random.normal(k1, (N, C, H, W), jnp.float32))
    target = jax.random.uniform(k2, (N, C, H, W), dtype=jnp.float32)

    loss = jax.block_until_ready(cross_entropy_loss_2d(output, target))
    ref = _reference_bce_mean(output, target)
    assert jnp.allclose(loss, ref, rtol=1e-5, atol=1e-5), (loss, ref)

    # Larger shape: multiple grid steps plus the in-kernel-masked boundary
    # tile (rows = 9216, TR = 4096 -> last tile has 1024 valid rows), all in
    # one pallas_call with no host-side slice or pad.
    N2, C2, H2, W2 = 2, 4, 384, 384
    output2 = jax.nn.sigmoid(jax.random.normal(k3, (N2, C2, H2, W2), jnp.float32))
    target2 = jax.random.uniform(k4, (N2, C2, H2, W2), dtype=jnp.float32)

    loss2 = jax.block_until_ready(cross_entropy_loss_2d(output2, target2))
    ref2 = _reference_bce_mean(output2, target2)
    assert jnp.allclose(loss2, ref2, rtol=1e-4, atol=1e-6), (loss2, ref2)

    print("KERNEL_OK")
</pallas_src>

<mosaic_0001>
module attributes {stable_mosaic.version = 11 : i64} {
  func.func @_bce_sum_kernel(%arg0: i32, %arg1: memref<16x128xf32, #tpu.memory_space<vmem>>, %arg2: memref<16x128xf32, #tpu.memory_space<vmem>>, %arg3: memref<1x1xf32, #tpu.memory_space<smem>>, %arg4: memref<8x128xf32, #tpu.memory_space<vmem>>) attributes {dimension_semantics = [#tpu.dimension_semantics<arbitrary>], iteration_bounds = array<i64: 1>, scalar_prefetch = 0 : i64, scratch_operands = 1 : i64, tpu.core_type = #tpu.core_type<tc>, window_params = [{transform_indices = @transform_0, window_bounds = array<i64: 16, 128>}, {transform_indices = @transform_1, window_bounds = array<i64: 16, 128>}, {transform_indices = @transform_2, window_bounds = array<i64: 1, 1>}]} {
    %c0_i32 = arith.constant 0 : i32
    %0 = arith.cmpi eq, %arg0, %c0_i32 : i32
    %1 = arith.extui %0 : i1 to i32
    %c0_i32_0 = arith.constant 0 : i32
    %2 = arith.cmpi ne, %1, %c0_i32_0 : i32
    scf.if %2 {
      %cst = arith.constant 0.000000e+00 : f32
      %16 = vector.broadcast %cst : f32 to vector<8x128xf32>
      %c0_11 = arith.constant 0 : index
      %c0_12 = arith.constant 0 : index
      %17 = vector.load %arg4[%c0_11, %c0_12] : memref<8x128xf32, #tpu.memory_space<vmem>>, vector<8x128xf32>
      tpu.vector_store %arg4[%c0_11, %c0_12], %16 {strides = array<i32>} : memref<8x128xf32, #tpu.memory_space<vmem>>, vector<8x128xf32>,
    } else {
    }
    %c0 = arith.constant 0 : index
    %c0_1 = arith.constant 0 : index
    %3 = vector.load %arg1[%c0, %c0_1] : memref<16x128xf32, #tpu.memory_space<vmem>>, vector<16x128xf32>
    %c0_2 = arith.constant 0 : index
    %c0_3 = arith.constant 0 : index
    %4 = vector.load %arg2[%c0_2, %c0_3] : memref<16x128xf32, #tpu.memory_space<vmem>>, vector<16x128xf32>
    %c16_i32 = arith.constant 16 : i32
    %5 = arith.muli %arg0, %c16_i32 : i32
    %c16_i32_4 = arith.constant 16 : i32
    %6 = arith.subi %c16_i32_4, %5 : i32
    %c16_i32_5 = arith.constant 16 : i32
    %7 = arith.cmpi sge, %6, %c16_i32_5 : i32
    %8 = arith.extui %7 : i1 to i32
    %c0_i32_6 = arith.constant 0 : i32
    %9 = arith.cmpi ne, %8, %c0_i32_6 : i32
    scf.if %9 {
      %c0_11 = arith.constant 0 : index
      %c0_12 = arith.constant 0 : index
      %16 = vector.load %arg4[%c0_11, %c0_12] : memref<8x128xf32, #tpu.memory_space<vmem>>, vector<8x128xf32>
      %17 = math.log %3 : vector<16x128xf32>
      %cst = arith.constant -1.000000e+02 : f32
      %18 = vector.broadcast %cst : f32 to vector<16x128xf32>
      %19 = arith.maximumf %17, %18 : vector<16x128xf32>
      %cst_13 = arith.constant 1.000000e+00 : f32
      %20 = vector.broadcast %cst_13 : f32 to vector<16x128xf32>
      %21 = arith.subf %20, %3 : vector<16x128xf32>
      %22 = math.log %21 : vector<16x128xf32>
      %cst_14 = arith.constant -1.000000e+02 : f32
      %23 = vector.broadcast %cst_14 : f32 to vector<16x128xf32>
      %24 = arith.maximumf %22, %23 : vector<16x128xf32>
      %25 = arith.subf %19, %24 : vector<16x128xf32>
      %26 = arith.mulf %4, %25 : vector<16x128xf32>
      %27 = arith.addf %24, %26 : vector<16x128xf32>
      %28 = vector.shape_cast %27 : vector<16x128xf32> to vector<2x8x128xf32>
      %cst_15 = arith.constant dense<0.000000e+00> : vector<8x128xf32>
      %29 = vector.multi_reduction <add>, %28, %cst_15 [0] : vector<2x8x128xf32> to vector<8x128xf32>
      %30 = arith.addf %16, %29 : vector<8x128xf32>
      %c0_16 = arith.constant 0 : index
      %c0_17 = arith.constant 0 : index
      %31 = vector.load %arg4[%c0_16, %c0_17] : memref<8x128xf32, #tpu.memory_space<vmem>>, vector<8x128xf32>
      tpu.vector_store %arg4[%c0_16, %c0_17], %30 {strides = array<i32>} : memref<8x128xf32, #tpu.memory_space<vmem>>, vector<8x128xf32>,
    } else {
    }
    %c16_i32_7 = arith.constant 16 : i32
    %10 = arith.cmpi slt, %6, %c16_i32_7 : i32
    %11 = arith.extui %10 : i1 to i32
    %c0_i32_8 = arith.constant 0 : i32
    %12 = arith.cmpi ne, %11, %c0_i32_8 : i32
    scf.if %12 {
      %16 = tpu.iota {dimensions = array<i32: 0>} : vector<16x128xi32>
      %17 = vector.broadcast %6 : i32 to vector<16x128xi32>
      %18 = arith.cmpi slt, %16, %17 : vector<16x128xi32>
      %c0_11 = arith.constant 0 : index
      %c0_12 = arith.constant 0 : index
      %19 = vector.load %arg4[%c0_11, %c0_12] : memref<8x128xf32, #tpu.memory_space<vmem>>, vector<8x128xf32>
      %cst = arith.constant 1.000000e+00 : f32
      %20 = vector.broadcast %cst : f32 to vector<16x128xf32>
      %21 = arith.select %18, %3, %20 : vector<16x128xi1>, vector<16x128xf32>
      %cst_13 = arith.constant 1.000000e+00 : f32
      %22 = vector.broadcast %cst_13 : f32 to vector<16x128xf32>
      %23 = arith.select %18, %4, %22 : vector<16x128xi1>, vector<16x128xf32>
      %24 = math.log %21 : vector<16x128xf32>
      %cst_14 = arith.constant -1.000000e+02 : f32
      %25 = vector.broadcast %cst_14 : f32 to vector<16x128xf32>
      %26 = arith.maximumf %24, %25 : vector<16x128xf32>
      %cst_15 = arith.constant 1.000000e+00 : f32
      %27 = vector.broadcast %cst_15 : f32 to vector<16x128xf32>
      %28 = arith.subf %27, %21 : vector<16x128xf32>
      %29 = math.log %28 : vector<16x128xf32>
      %cst_16 = arith.constant -1.000000e+02 : f32
      %30 = vector.broadcast %cst_16 : f32 to vector<16x128xf32>
      %31 = arith.maximumf %29, %30 : vector<16x128xf32>
      %32 = arith.subf %26, %31 : vector<16x128xf32>
      %33 = arith.mulf %23, %32 : vector<16x128xf32>
      %34 = arith.addf %31, %33 : vector<16x128xf32>
      %35 = vector.shape_cast %34 : vector<16x128xf32> to vector<2x8x128xf32>
      %cst_17 = arith.constant dense<0.000000e+00> : vector<8x128xf32>
      %36 = vector.multi_reduction <add>, %35, %cst_17 [0] : vector<2x8x128xf32> to vector<8x128xf32>
      %37 = arith.addf %19, %36 : vector<8x128xf32>
      %c0_18 = arith.constant 0 : index
      %c0_19 = arith.constant 0 : index
      %38 = vector.load %arg4[%c0_18, %c0_19] : memref<8x128xf32, #tpu.memory_space<vmem>>, vector<8x128xf32>
      tpu.vector_store %arg4[%c0_18, %c0_19], %37 {strides = array<i32>} : memref<8x128xf32, #tpu.memory_space<vmem>>, vector<8x128xf32>,
    } else {
    }
    %c0_i32_9 = arith.constant 0 : i32
    %13 = arith.cmpi eq, %arg0, %c0_i32_9 : i32
    %14 = arith.extui %13 : i1 to i32
    %c0_i32_10 = arith.constant 0 : i32
    %15 = arith.cmpi ne, %14, %c0_i32_10 : i32
    scf.if %15 {
      %c0_11 = arith.constant 0 : index
      %c0_12 = arith.constant 0 : index
      %16 = vector.load %arg4[%c0_11, %c0_12] : memref<8x128xf32, #tpu.memory_space<vmem>>, vector<8x128xf32>
      %17 = vector.shape_cast %16 : vector<8x128xf32> to vector<1x8x128xf32>
      %cst = arith.constant dense<0.000000e+00> : vector<1xf32>
      %18 = vector.multi_reduction <add>, %17, %cst [1, 2] : vector<1x8x128xf32> to vector<1xf32>
      %19 = vector.shape_cast %18 : vector<1xf32> to vector<1x1x1xf32>
      %20 = vector.extract %19[0, 0, 0] : f32 from vector<1x1x1xf32>
      %cst_13 = arith.constant 0.000000e+00 : f32
      %21 = arith.subf %cst_13, %20 : f32
      %c0_14 = arith.constant 0 : index
      %c0_15 = arith.constant 0 : index
      %22 = memref.load %arg3[%c0_14, %c0_15] : memref<1x1xf32, #tpu.memory_space<smem>>
      memref.store %21, %arg3[%c0_14, %c0_15] : memref<1x1xf32, #tpu.memory_space<smem>>
    } else {
    }
    return
  }
  func.func @transform_0(%arg0: i32) -> (i32, i32) {
    %c0_i32 = arith.constant 0 : i32
    %c0_i32_0 = arith.constant 0 : i32
    return %arg0, %c0_i32 : i32, i32
  }
  func.func @transform_1(%arg0: i32) -> (i32, i32) {
    %c0_i32 = arith.constant 0 : i32
    %c0_i32_0 = arith.constant 0 : i32
    return %arg0, %c0_i32 : i32, i32
  }
  func.func @transform_2(%arg0: i32) -> (i32, i32) {
    %c0_i32 = arith.constant 0 : i32
    %c0_i32_0 = arith.constant 0 : i32
    %c0_i32_1 = arith.constant 0 : i32
    return %c0_i32, %c0_i32_0 : i32, i32
  }
}

</mosaic_0001>

<bundles_post_ra>
// kernel: tpu_custom_call.1
= control target key start
LH: loop header
LB: loop body
LE: loop exit
PB: predicated region body
PF: predicated region fallthrough
CT: control target
= control target key end

     0   :  { %7 = vsyncpa [#allocation4], 0  ;;  %s246_s0 = inlined_call_operand.hbm [shape: f32[16,128], index: 0, kind: input, shape index: {}]   ;;  %s247_s1 = inlined_call_operand.hbm [shape: f32[16,128], index: 1, kind: input, shape index: {}]   ;;  %s248_s2 = inlined_call_operand.hbm [shape: f32[1,1], index: 2, kind: output, shape index: {}]  }
   0x1   :  { %8 = vsyncpa [#allocation7], 0 }
   0x2   :  { %9 = vsyncpa [#allocation5], 0  ;;  %s217_s9 = smov [#allocation3]  }
   0x3   :  { %s15_s10 = sshll.u32 %s217_s9, 4  ;;  %s16_s10 = int_to_ptr.vmem [resolvable:$true] %s15_s10 }
   0x4   :  { %s171_s11 = scalar_lea.vmem %s16_s10, 256  ;;  %p176_p1 = scmp.lt.s32.totalorder %s16_s10, %s16_s10 }
   0x5   :  { %p172_p0 = scmp.ne.s32.totalorder %s16_s10, %s171_s11  ;;  %p177_p2 = scmp.lt.s32.totalorder %s171_s11, %s171_s11 }
   0x7   :  { %p178_p3 = por %p177_p2, %p176_p1 }
   0x9   :  { %p179_p4 = pnand %p178_p3, %p172_p0 }
   0xb   :  { %182 = shalt.err (!%p179_p4)
}
   0xc   :  { %s218_s12 = smov 128   ;;  %s219_s13 = smov 8  }
   0xd   :  { %21 = dma.hbm_to_vmem [thread:$0]  %s246_s0, 256, %s16_s10, [#allocation4], %s218_s12, %s218_s12, %s219_s13  }
   0xe   :  { %s220_s16 = smov [#allocation6]  }
   0xf   :  { %s27_s17 = sshll.u32 %s220_s16, 4  ;;  %s28_s17 = int_to_ptr.vmem [resolvable:$true] %s27_s17 }
  0x10   :  { %s191_s18 = scalar_lea.vmem %s28_s17, 256  ;;  %p196_p6 = scmp.lt.s32.totalorder %s28_s17, %s28_s17 }
  0x11   :  { %p192_p5 = scmp.ne.s32.totalorder %s28_s17, %s191_s18  ;;  %p197_p7 = scmp.lt.s32.totalorder %s191_s18, %s191_s18 }
  0x13   :  { %p198_p8 = por %p197_p7, %p196_p6 }
  0x15   :  { %p199_p9 = pnand %p198_p8, %p192_p5 }
  0x17   :  { %202 = shalt.err (!%p199_p9)
}
  0x18   :  { %33 = dma.hbm_to_vmem [thread:$0]  %s247_s1, 256, %s28_s17, [#allocation7], %s218_s12, %s218_s12, %s219_s13  }
  0x19   :  { %211 = dma.done.wait [#allocation4], 256  }
  0x1a   :  { %212 = vsyncadd [#allocation4], 4294967040 }
  0x1b   :  { %213 = dma.done.wait [#allocation7], 256  }
  0x1c   :  { %214 = vsyncadd [#allocation7], 4294967040  ;;  %v45_v0 = vld [vmem:[#allocation3] sm:$0xff]  ;;  %v46_v1 = vld [vmem:[#allocation3 + $0x8] sm:$0xff]  ;;  %s221_s21 = smov [#allocation8]  }
  0x1d   :  { %155 = vlog2.f32 %v45_v0  ;;  %v62_v2 = vsub.f32 1.0, %v45_v0  ;;  %v63_v3 = vsub.f32 1.0, %v46_v1  ;;  %v47_v15 = vld [vmem:[#allocation6] sm:$0xff]  ;;  %v48_v17 = vld [vmem:[#allocation6 + $0x8] sm:$0xff] }
  0x1e   :  { %157 = vlog2.f32 %v46_v1 }
  0x1f   :  { %159 = vlog2.f32 %v62_v2 }
  0x20   :  { %161 = vlog2.f32 %v63_v3 }
  0x2a   :  { %v156_v4 = vpop.eup %155 }
  0x2b   :  { %v158_v5 = vpop.eup %157  ;;  %v57_v6 = vmul.f32 0.6931472, %v156_v4 }
  0x2c   :  { %v160_v7 = vpop.eup %159  ;;  %v59_v8 = vmul.f32 0.6931472, %v158_v5 }
  0x2d   :  { %v162_v9 = vpop.eup %161  ;;  %v60_v10 = vmax.f32 %v57_v6, -100.0  ;;  %v65_v11 = vmul.f32 0.6931472, %v160_v7 }
  0x2e   :  { %v61_v12 = vmax.f32 %v59_v8, -100.0  ;;  %v67_v13 = vmul.f32 0.6931472, %v162_v9 }
  0x2f   :  { %v68_v14 = vmax.f32 %v65_v11, -100.0 }
  0x30   :  { %v69_v16 = vmax.f32 %v67_v13, -100.0 }
  0x31   :  { %v70_v18 = vsub.f32 %v60_v10, %v68_v14 }
  0x32   :  { %v71_v19 = vsub.f32 %v61_v12, %v69_v16 }
  0x33   :  { %v72_v20 = vmul.f32 %v70_v18, %v47_v15 }
  0x34   :  { %v73_v21 = vmul.f32 %v71_v19, %v48_v17 }
  0x35   :  { %v74_v22 = vadd.f32 %v72_v20, %v68_v14 }
  0x36   :  { %v75_v23 = vadd.f32 %v73_v21, %v69_v16 }
  0x38   :  { %v76_v24 = vadd.f32 %v75_v23, %v74_v22 }
  0x3a   :  { %121 = vadd.xlane.f32.xlu0 %v76_v24 }
  0xc3   :  { %v122_v25 = vpop.xlane.xlu0 %121 }
  0xc4   :  { %v123_v26 = vrot.slane %v122_v25, 4 }
  0xc6   :  { %v124_v27 = vadd.f32 %v123_v26, %v122_v25 }
  0xc8   :  { %v125_v28 = vrot.slane %v124_v27, 2 }
  0xca   :  { %v126_v29 = vadd.f32 %v125_v28, %v124_v27 }
  0xcc   :  { %v127_v30 = vrot.slane %v126_v29, 1 }
  0xce   :  { %v128_v31 = vadd.f32 %v127_v30, %v126_v29 }
  0xd0   :  { %148 = vpush %v128_v31 }
 0x101   :  { %s149_s0 = spop %148 }
 0x102   :  { %s130_s1 = ssub.f32 0.0, %s149_s0 }
 0x104   :  { %132 = sst [smem:[#allocation8]] %s130_s1 }
 0x105   :  { %140 = dma.smem_to_hbm %s221_s21, 16, %s248_s2, [#allocation5]  }
 0x106   :  { %215 = dma.done.wait [#allocation5], 16  }
 0x107   :  { %216 = vsyncadd [#allocation5], 4294967280 }
 0x108   :  { %144 = sfence }
 0x109   :  { %145 = vsyncpa [#allocation4], 1 }
 0x10a   :  { %146 = vsyncpa [#allocation7], 1 }
 0x10b   :  { %147 = vsyncpa [#allocation5], 1 }

</bundles_post_ra>
